<compile_context>
chip_gen: v7x
topology: tpu7x:2x2x1
jax: 0.10.0
libtpu: 0.0.40
codegen_flags: <defaults>
</compile_context>

<pallas_src>
import functools
import math

import jax
import jax.numpy as jnp
from jax import lax
from jax.experimental import pallas as pl
from jax.experimental.pallas import tpu as pltpu


# Contract last axis of x with last axis of W (torch [out, in] layout): x @ W^T.
_NT_DIMS = (((1,), (1,)), ((), ()))

_TM = 256  # row tile; multiple of 8. Sweep 256-512 per generation / VMEM budget.


def _gelu_tanh(y):
    # tanh-approx GELU (tanh runs on the EUP).
    # TODO(synk): HF "gelu" is the exact erf form; tanh approximation used here
    # (difference < 1e-3) because erf has no Mosaic lowering.
    c = 0.7978845608028654  # sqrt(2/pi)
    return 0.5 * y * (1.0 + jnp.tanh(c * (y + 0.044715 * y * y * y)))


# ---------------------------------------------------------------------------
# Kernel 1: linear (+ optional GELU):   y = act(x @ W^T + b)
#   used for the fused QKV projection and for BertIntermediate.
# ---------------------------------------------------------------------------
def _linear_kernel(x_ref, w_ref, b_ref, o_ref, *, gelu):
    y = lax.dot_general(x_ref[...], w_ref[...], _NT_DIMS,
                        preferred_element_type=jnp.float32)
    y = y + b_ref[...].astype(jnp.float32)
    if gelu:
        y = _gelu_tanh(y)
    o_ref[...] = y.astype(o_ref.dtype)


# ---------------------------------------------------------------------------
# Kernel 2: dense + residual add + LayerNorm:  LN(x @ W^T + b + res)
#   used for BertSelfOutput and BertOutput (dropout = identity at inference).
# ---------------------------------------------------------------------------
def _dense_add_ln_kernel(x_ref, res_ref, w_ref, b_ref, g_ref, beta_ref, o_ref,
                         *, eps):
    y = lax.dot_general(x_ref[...], w_ref[...], _NT_DIMS,
                        preferred_element_type=jnp.float32)
    y = y + b_ref[...].astype(jnp.float32) + res_ref[...].astype(jnp.float32)
    # Single-pass LayerNorm stats: only `y` stays live as a [tm, H] f32 temp.
    mean = jnp.mean(y, axis=-1, keepdims=True)
    mean_sq = jnp.mean(y * y, axis=-1, keepdims=True)
    inv = lax.rsqrt(mean_sq - mean * mean + eps)
    out = (y - mean) * inv * g_ref[...].astype(jnp.float32) \
        + beta_ref[...].astype(jnp.float32)
    o_ref[...] = out.astype(o_ref.dtype)


# ---------------------------------------------------------------------------
# Kernel 3: per-(batch, head) attention block: softmax(q k^T * scale) @ v
#   (qformer sequences are short; for long S use a flash-style kernel.)
# ---------------------------------------------------------------------------
def _attention_kernel(q_ref, k_ref, v_ref, o_ref, *, scale):
    q = q_ref[...]                                     # [S, d]
    k = k_ref[...]                                     # [S, d]
    v = v_ref[...]                                     # [S, d]
    s = lax.dot_general(q, k, _NT_DIMS,
                        preferred_element_type=jnp.float32) * scale   # [S, S]
    s = s - jnp.max(s, axis=-1, keepdims=True)
    p = jnp.exp(s)
    p = p / jnp.sum(p, axis=-1, keepdims=True)
    ctx = jnp.dot(p.astype(v.dtype), v, preferred_element_type=jnp.float32)
    o_ref[...] = ctx.astype(o_ref.dtype)
    # TODO(synk): additive attention_mask / head_mask / past_key_value support.


# ---------------------------------------------------------------------------
# Wrappers
# ---------------------------------------------------------------------------
def _row_tiling(M):
    if M <= _TM:
        tm = max(8, ((M + 7) // 8) * 8)        # whole problem in one tile
    else:
        tm = _TM
    Mp = pl.cdiv(M, tm) * tm
    return tm, Mp


def _pad_rows(x, Mp):
    M = x.shape[0]
    return x if Mp == M else jnp.pad(x, ((0, Mp - M), (0, 0)))


def _compiler_params():
    # "parallel" row-tile axis -> 2-TC sharding on v7x; raise scoped VMEM cap so
    # larger tiles fit on v5e/v6e (64 MiB is <= physical on all generations).
    return pltpu.CompilerParams(
        dimension_semantics=("parallel",),
        vmem_limit_bytes=64 * 1024 * 1024,
    )


def pallas_linear(x2, w, b, *, gelu=False):
    """x2: [M, H_in]; w: [H_out, H_in] (torch layout); b: [H_out] -> [M, H_out]."""
    M, h_in = x2.shape
    h_out = w.shape[0]
    tm, Mp = _row_tiling(M)
    xp = _pad_rows(x2, Mp)
    itemsize = jnp.dtype(x2.dtype).itemsize
    cost = pl.CostEstimate(
        flops=2 * Mp * h_in * h_out,
        transcendentals=Mp * h_out if gelu else 0,
        bytes_accessed=(Mp * h_in + Mp * h_out + h_in * h_out + h_out) * itemsize,
    )
    out = pl.pallas_call(
        functools.partial(_linear_kernel, gelu=gelu),
        out_shape=jax.ShapeDtypeStruct((Mp, h_out), x2.dtype),
        grid_spec=pltpu.PrefetchScalarGridSpec(
            num_scalar_prefetch=0,
            grid=(Mp // tm,),
            in_specs=[
                pl.BlockSpec((tm, h_in), lambda i: (i, 0)),     # x rows (pipelined)
                pl.BlockSpec((h_out, h_in), lambda i: (0, 0)),  # weight (grid-invariant)
                pl.BlockSpec((1, h_out), lambda i: (0, 0)),     # bias
            ],
            out_specs=pl.BlockSpec((tm, h_out), lambda i: (i, 0)),
        ),
        compiler_params=_compiler_params(),
        cost_estimate=cost,
    )(xp, w, b.reshape(1, h_out))
    return out[:M]


def pallas_dense_add_ln(x2, res2, w, b, gamma, beta, *, eps):
    """LN((x2 @ w^T + b) + res2); x2: [M, H_in]; res2: [M, H_out]; w: [H_out, H_in]."""
    M, h_in = x2.shape
    h_out = w.shape[0]
    tm, Mp = _row_tiling(M)
    xp = _pad_rows(x2, Mp)
    rp = _pad_rows(res2, Mp)
    itemsize = jnp.dtype(x2.dtype).itemsize
    cost = pl.CostEstimate(
        flops=2 * Mp * h_in * h_out + 8 * Mp * h_out,
        transcendentals=Mp,                          # rsqrt per row
        bytes_accessed=(Mp * h_in + 2 * Mp * h_out + h_in * h_out + 3 * h_out)
        * itemsize,
    )
    out = pl.pallas_call(
        functools.partial(_dense_add_ln_kernel, eps=eps),
        out_shape=jax.ShapeDtypeStruct((Mp, h_out), x2.dtype),
        grid_spec=pltpu.PrefetchScalarGridSpec(
            num_scalar_prefetch=0,
            grid=(Mp // tm,),
            in_specs=[
                pl.BlockSpec((tm, h_in), lambda i: (i, 0)),     # x rows
                pl.BlockSpec((tm, h_out), lambda i: (i, 0)),    # residual rows
                pl.BlockSpec((h_out, h_in), lambda i: (0, 0)),  # weight (grid-invariant)
                pl.BlockSpec((1, h_out), lambda i: (0, 0)),     # bias
                pl.BlockSpec((1, h_out), lambda i: (0, 0)),     # LN gamma
                pl.BlockSpec((1, h_out), lambda i: (0, 0)),     # LN beta
            ],
            out_specs=pl.BlockSpec((tm, h_out), lambda i: (i, 0)),
        ),
        compiler_params=_compiler_params(),
        cost_estimate=cost,
    )(xp, rp, w, b.reshape(1, h_out), gamma.reshape(1, h_out),
      beta.reshape(1, h_out))
    return out[:M]


def pallas_attention(q, k, v, *, num_heads):
    """q, k, v: [B, S, H] -> context [B, S, H] (no mask; eval-mode dropout)."""
    B, S, H = q.shape
    d = H // num_heads
    scale = 1.0 / math.sqrt(d)

    def split_heads(x):   # [B, S, H] -> [B*nh, S, d]
        return (x.reshape(B, S, num_heads, d)
                 .transpose(0, 2, 1, 3)
                 .reshape(B * num_heads, S, d))

    qh, kh, vh = split_heads(q), split_heads(k), split_heads(v)
    bh = B * num_heads
    head_spec = pl.BlockSpec((None, S, d), lambda i: (i, 0, 0))
    ctx = pl.pallas_call(
        functools.partial(_attention_kernel, scale=scale),
        out_shape=jax.ShapeDtypeStruct((bh, S, d), q.dtype),
        grid_spec=pltpu.PrefetchScalarGridSpec(
            num_scalar_prefetch=0,
            grid=(bh,),
            in_specs=[head_spec, head_spec, head_spec],
            out_specs=pl.BlockSpec((None, S, d), lambda i: (i, 0, 0)),
        ),
        compiler_params=pltpu.CompilerParams(
            dimension_semantics=("parallel",)),
    )(qh, kh, vh)
    return (ctx.reshape(B, num_heads, S, d)
               .transpose(0, 2, 1, 3)
               .reshape(B, S, H))


def bert_layer_forward(hidden_states, params, *, num_heads, eps=1e-12):
    """BertLayer forward (self-attention path: query_length=0, no cross-attn,
    no attention_mask, eval-mode dropout)."""
    B, S, H = hidden_states.shape
    x2 = hidden_states.reshape(B * S, H)

    # --- BertSelfAttention: fused QKV projection + per-head softmax(QK^T)V ---
    qkv = pallas_linear(x2, params["qkv_w"], params["qkv_b"])       # [M, 3H]
    q = qkv[:, :H].reshape(B, S, H)
    k = qkv[:, H:2 * H].reshape(B, S, H)
    v = qkv[:, 2 * H:].reshape(B, S, H)
    ctx = pallas_attention(q, k, v, num_heads=num_heads)            # [B, S, H]

    # --- BertSelfOutput: dense + residual + LayerNorm (fused) ---
    attn_out = pallas_dense_add_ln(
        ctx.reshape(B * S, H), x2,
        params["attn_out_w"], params["attn_out_b"],
        params["ln1_g"], params["ln1_b"], eps=eps)                  # [M, H]

    # --- Feed-forward: BertIntermediate (dense+GELU) + BertOutput (dense+res+LN)
    inter = pallas_linear(attn_out, params["inter_w"], params["inter_b"],
                          gelu=True)                                # [M, I]
    layer_out = pallas_dense_add_ln(
        inter, attn_out,
        params["out_w"], params["out_b"],
        params["ln2_g"], params["ln2_b"], eps=eps)                  # [M, H]
    return layer_out.reshape(B, S, H)


if __name__ == "__main__":
    # Small config consistent with BertLayer: hidden=32, heads=4, intermediate=128.
    B, S, H, NH, I = 2, 8, 32, 4, 128
    eps = 1e-12

    key = jax.random.PRNGKey(0)
    ks = jax.random.split(key, 18)

    def mk(k, shape, scale=0.02):
        return scale * jax.random.normal(k, shape, dtype=jnp.float32)

    hidden_states = jax.random.normal(ks[0], (B, S, H), dtype=jnp.float32)
    wq, bq = mk(ks[1], (H, H)), mk(ks[2], (H,))
    wk, bk = mk(ks[3], (H, H)), mk(ks[4], (H,))
    wv, bv = mk(ks[5], (H, H)), mk(ks[6], (H,))
    wo, bo = mk(ks[7], (H, H)), mk(ks[8], (H,))
    g1, be1 = 1.0 + mk(ks[9], (H,), 0.1), mk(ks[10], (H,), 0.1)
    wi, bi = mk(ks[11], (I, H)), mk(ks[12], (I,))
    w2, b2 = mk(ks[13], (H, I)), mk(ks[14], (H,))
    g2, be2 = 1.0 + mk(ks[15], (H,), 0.1), mk(ks[16], (H,), 0.1)

    params = {
        # QKV weights concatenated ONCE at init (outside the per-call path).
        "qkv_w": jnp.concatenate([wq, wk, wv], axis=0),   # [3H, H] torch layout
        "qkv_b": jnp.concatenate([bq, bk, bv], axis=0),   # [3H]
        "attn_out_w": wo, "attn_out_b": bo,
        "ln1_g": g1, "ln1_b": be1,
        "inter_w": wi, "inter_b": bi,
        "out_w": w2, "out_b": b2,
        "ln2_g": g2, "ln2_b": be2,
    }

    out = bert_layer_forward(hidden_states, params, num_heads=NH, eps=eps)
    out = jax.block_until_ready(out)

    # ---- pure-JAX reference (eval-mode BertLayer, query_length=0) ----
    def dense(x, wt, bias):
        return x @ wt.T + bias

    def layer_norm(y, g, b):
        mu = y.mean(-1, keepdims=True)
        var = ((y - mu) ** 2).mean(-1, keepdims=True)
        return (y - mu) * jax.lax.rsqrt(var + eps) * g + b

    x = hidden_states
    qr, kr, vr = dense(x, wq, bq), dense(x, wk, bk), dense(x, wv, bv)

    def heads(t):
        return t.reshape(B, S, NH, H // NH).transpose(0, 2, 1, 3)

    qh, kh, vh = heads(qr), heads(kr), heads(vr)
    scores = jnp.einsum("bhqd,bhkd->bhqk", qh, kh) / math.sqrt(H // NH)
    probs = jax.nn.softmax(scores, axis=-1)
    ctx_ref = (jnp.einsum("bhqk,bhkd->bhqd", probs, vh)
               .transpose(0, 2, 1, 3).reshape(B, S, H))
    attn_out_ref = layer_norm(dense(ctx_ref, wo, bo) + x, g1, be1)
    inter_ref = dense(attn_out_ref, wi, bi)
    c = 0.7978845608028654
    inter_ref = 0.5 * inter_ref * (1.0 + jnp.tanh(
        c * (inter_ref + 0.044715 * inter_ref ** 3)))
    ref = layer_norm(dense(inter_ref, w2, b2) + attn_out_ref, g2, be2)

    max_diff = jnp.max(jnp.abs(out - ref))
    assert jnp.allclose(out, ref, atol=1e-4, rtol=1e-4), (
        f"mismatch vs reference: max abs diff {max_diff}")
    print("KERNEL_OK")
</pallas_src>

<mosaic_0001>
module attributes {stable_mosaic.version = 11 : i64} {
  func.func @_linear_kernel(%arg0: i32, %arg1: memref<16x32xf32, #tpu.memory_space<vmem>>, %arg2: memref<96x32xf32, #tpu.memory_space<vmem>>, %arg3: memref<1x96xf32, #tpu.memory_space<vmem>>, %arg4: memref<16x96xf32, #tpu.memory_space<vmem>>) attributes {dimension_semantics = [#tpu.dimension_semantics<parallel>], iteration_bounds = array<i64: 1>, scalar_prefetch = 0 : i64, scratch_operands = 0 : i64, tpu.core_type = #tpu.core_type<tc>, window_params = [{transform_indices = @transform_0, window_bounds = array<i64: 16, 32>}, {pipeline_mode = #tpu.pipeline_mode<synchronous>, transform_indices = @transform_1, window_bounds = array<i64: 96, 32>}, {pipeline_mode = #tpu.pipeline_mode<synchronous>, transform_indices = @transform_2, window_bounds = array<i64: 1, 96>}, {transform_indices = @transform_3, window_bounds = array<i64: 16, 96>}]} {
    %c0 = arith.constant 0 : index
    %c0_0 = arith.constant 0 : index
    %0 = vector.load %arg1[%c0, %c0_0] : memref<16x32xf32, #tpu.memory_space<vmem>>, vector<16x32xf32>
    %c0_1 = arith.constant 0 : index
    %c0_2 = arith.constant 0 : index
    %1 = vector.load %arg2[%c0_1, %c0_2] : memref<96x32xf32, #tpu.memory_space<vmem>>, vector<96x32xf32>
    %cst = arith.constant dense<0.000000e+00> : vector<16x96xf32>
    %2 = tpu.matmul %0, %1, %cst {dimension_numbers = #tpu.dot_dimension_numbers<[1], [1], [0], [0], [0, 0, 1, 0], [], []>} : vector<16x32xf32>, vector<96x32xf32>, vector<16x96xf32> -> vector<16x96xf32>
    %c0_3 = arith.constant 0 : index
    %c0_4 = arith.constant 0 : index
    %3 = vector.load %arg3[%c0_3, %c0_4] : memref<1x96xf32, #tpu.memory_space<vmem>>, vector<1x96xf32>
    %4 = vector.broadcast %3 : vector<1x96xf32> to vector<16x96xf32>
    %5 = arith.addf %2, %4 : vector<16x96xf32>
    %c0_5 = arith.constant 0 : index
    %c0_6 = arith.constant 0 : index
    %6 = vector.load %arg4[%c0_5, %c0_6] : memref<16x96xf32, #tpu.memory_space<vmem>>, vector<16x96xf32>
    tpu.vector_store %arg4[%c0_5, %c0_6], %5 {strides = array<i32>} : memref<16x96xf32, #tpu.memory_space<vmem>>, vector<16x96xf32>,
    return
  }
  func.func @transform_0(%arg0: i32) -> (i32, i32) {
    %c0_i32 = arith.constant 0 : i32
    %c0_i32_0 = arith.constant 0 : i32
    return %arg0, %c0_i32 : i32, i32
  }
  func.func @transform_1(%arg0: i32) -> (i32, i32) {
    %c0_i32 = arith.constant 0 : i32
    %c0_i32_0 = arith.constant 0 : i32
    %c0_i32_1 = arith.constant 0 : i32
    return %c0_i32, %c0_i32_0 : i32, i32
  }
  func.func @transform_2(%arg0: i32) -> (i32, i32) {
    %c0_i32 = arith.constant 0 : i32
    %c0_i32_0 = arith.constant 0 : i32
    %c0_i32_1 = arith.constant 0 : i32
    return %c0_i32, %c0_i32_0 : i32, i32
  }
  func.func @transform_3(%arg0: i32) -> (i32, i32) {
    %c0_i32 = arith.constant 0 : i32
    %c0_i32_0 = arith.constant 0 : i32
    return %arg0, %c0_i32 : i32, i32
  }
}

</mosaic_0001>

<bundles_post_ra>
// kernel: tpu_custom_call.1
= control target key start
LH: loop header
LB: loop body
LE: loop exit
PB: predicated region body
PF: predicated region fallthrough
CT: control target
= control target key end

     0   :  { %8 = vsyncpa [#allocation3], 0  ;;  %s528_s0 = inlined_call_operand.hbm [shape: f32[16,32], index: 0, kind: input, shape index: {}]   ;;  %s529_s1 = inlined_call_operand.hbm [shape: f32[96,32], index: 1, kind: input, shape index: {}]   ;;  %s530_s2 = inlined_call_operand.hbm [shape: f32[1,96], index: 2, kind: input, shape index: {}]   ;;  %s531_s3 = inlined_call_operand.hbm [shape: f32[16,96], index: 3, kind: output, shape index: {}]  }
   0x1   :  { %9 = vsyncpa [#allocation6], 0 }
   0x2   :  { %10 = vsyncpa [#allocation4], 0  ;;  %s406_s12 = smov [#allocation5]   ;;  %s407_s14 = smov [#allocation2]  }
   0x3   :  { %s28_s13 = sshll.u32 %s406_s12, 4  ;;  %s16_s15 = sshll.u32 %s407_s14, 4  ;;  %s29_s13 = int_to_ptr.vmem [resolvable:$true] %s28_s13  ;;  %s432_s15 = int_to_ptr.vmem [resolvable:$true] %s16_s15 }
   0x4   :  { %s312_s18 = scalar_lea.hbm %s529_s1, 1536 }
   0x5   :  { %p313_p0 = scmp.ne.s32.totalorder %s529_s1, %s312_s18  ;;  %p316_p1 = scmp.lt.u32.totalorder %s312_s18, %s529_s1 }
   0x7   :  { %p318_p2 = pnand %p316_p1, %p313_p0 }
   0x9   :  { %321 = shalt.err (!%p318_p2)
}
   0xa   :  { %s322_s23 = scalar_lea.vmem %s29_s13, 1536  ;;  %p327_p4 = scmp.lt.s32.totalorder %s29_s13, %s29_s13 }
   0xb   :  { %p323_p3 = scmp.ne.s32.totalorder %s29_s13, %s322_s23  ;;  %p328_p5 = scmp.lt.s32.totalorder %s322_s23, %s322_s23 }
   0xd   :  { %p329_p6 = por %p328_p5, %p327_p4 }
   0xf   :  { %p330_p7 = pnand %p329_p6, %p323_p3 }
  0x11   :  { %333 = shalt.err (!%p330_p7)
}
  0x12   :  { %s408_s24 = smov 128   ;;  %s409_s25 = smov 8  }
  0x13   :  { %34 = dma.hbm_to_vmem [thread:$0]  %s529_s1, 1536, %s29_s13, [#allocation6], %s408_s24, %s408_s24, %s409_s25  }
  0x14   :  { %s334_s30 = scalar_lea.hbm %s528_s0, 256 }
  0x15   :  { %p335_p8 = scmp.ne.s32.totalorder %s528_s0, %s334_s30  ;;  %p338_p9 = scmp.lt.u32.totalorder %s334_s30, %s528_s0 }
  0x17   :  { %p340_p10 = pnand %p338_p9, %p335_p8 }
  0x19   :  { %343 = shalt.err (!%p340_p10)
}
  0x1a   :  { %s344_s8 = scalar_lea.vmem %s432_s15, 256  ;;  %p349_p12 = scmp.lt.s32.totalorder %s432_s15, %s432_s15 }
  0x1b   :  { %p345_p11 = scmp.ne.s32.totalorder %s432_s15, %s344_s8  ;;  %p350_p13 = scmp.lt.s32.totalorder %s344_s8, %s344_s8 }
  0x1d   :  { %p351_p0 = por %p350_p13, %p349_p12 }
  0x1f   :  { %p352_p1 = pnand %p351_p0, %p345_p11 }
  0x21   :  { %355 = shalt.err (!%p352_p1)
}
  0x22   :  { %22 = dma.hbm_to_vmem [thread:$0]  %s528_s0, 256, %s432_s15, [#allocation3], %s408_s24, %s408_s24, %s409_s25  }
  0x23   :  { %s410_s10 = smov [#allocation7]   ;;  %s356_s14 = scalar_lea.hbm %s530_s2, 16 }
  0x24   :  { %s41_s11 = sshll.u32 %s410_s10, 4  ;;  %p357_p2 = scmp.ne.s32.totalorder %s530_s2, %s356_s14  ;;  %s42_s11 = int_to_ptr.vmem [resolvable:$true] %s41_s11 }
  0x25   :  { %p360_p3 = scmp.lt.u32.totalorder %s356_s14, %s530_s2 }
  0x27   :  { %p362_p4 = pnand %p360_p3, %p357_p2 }
  0x29   :  { %365 = shalt.err (!%p362_p4)
}
  0x2a   :  { %s366_s20 = scalar_lea.vmem %s42_s11, 16  ;;  %s370_s0 = scalar_lea.vmem %s42_s11, 32 }
  0x2b   :  { %p367_p5 = scmp.ne.s32.totalorder %s42_s11, %s366_s20  ;;  %p371_p6 = scmp.lt.s32.totalorder %s42_s11, %s42_s11 }
  0x2c   :  { %p372_p7 = scmp.lt.s32.totalorder %s370_s0, %s366_s20 }
  0x2e   :  { %p373_p8 = por %p372_p7, %p371_p6 }
  0x30   :  { %p374_p9 = pnand %p373_p8, %p367_p5 }
  0x32   :  { %377 = shalt.err (!%p374_p9)
}
  0x33   :  { %44 = dma.hbm_to_vmem [thread:$0]  %s530_s2, 16, %s42_s11, [#allocation6]  }
  0x34   :  { %400 = dma.done.wait [#allocation3], 256  }
  0x35   :  { %401 = vsyncadd [#allocation3], 4294967040 }
  0x36   :  { %402 = dma.done.wait [#allocation6], 1552  }
  0x37   :  { %403 = vsyncadd [#allocation6], 4294965744  ;;  %vm75_vm0 = vcmask 261120   ;;  %v56_v1 = vld [vmem:[#allocation5] sm:$0xff]  ;;  %v57_v2 = vld [vmem:[#allocation5 + $0x8] sm:$0xff]  ;;  %s411_s2 = smov [#allocation8]  }
  0x38   :  { %vm483_vm1 = vmpackc.low %vm75_vm0, %vm75_vm0  ;;  %v58_v3 = vld [vmem:[#allocation5 + $0x10] sm:$0xff]  ;;  %v270_v4 = vpack.c.bf16 %v57_v2, %v56_v1  ;;  %v59_v5 = vld [vmem:[#allocation5 + $0x18] sm:$0xff]  ;;  %s201_s22 = sshll.u32 %s411_s2, 4  ;;  %vm193_vm2 = vcmask 785408   ;;  %s202_s22 = int_to_ptr.vmem [resolvable:$true] %s201_s22 }
  0x39   :  { %v276_v6 = vpack.c.bf16 %v59_v5, %v58_v3  ;;  %v54_v7 = vld [vmem:[#allocation2] sm:$0xff]  ;;  %v60_v8 = vld [vmem:[#allocation5 + $0x20] sm:$0xff]  ;;  %v61_v9 = vld [vmem:[#allocation5 + $0x28] sm:$0xff]  ;;  %s378_s23 = scalar_lea.vmem %s202_s22, 256  ;;  %p383_p11 = scmp.lt.s32.totalorder %s202_s22, %s202_s22 }
  0x3a   :  { %272 = vmatprep.subr.msk.bf16.mxu0 %vm483_vm1, %v270_v4  ;;  %267 = vmatprep.mubr.msk.f32.mxu0 %vm75_vm0, %v54_v7  ;;  %v282_v10 = vpack.c.bf16 %v61_v9, %v60_v8  ;;  %v62_v11 = vld [vmem:[#allocation5 + $0x30] sm:$0xff]  ;;  %v63_v12 = vld [vmem:[#allocation5 + $0x38] sm:$0xff]  ;;  %v64_v14 = vld [vmem:[#allocation5 + $0x40] sm:$0xff]  ;;  %p379_p10 = scmp.ne.s32.totalorder %s202_s22, %s378_s23  ;;  %p384_p12 = scmp.lt.s32.totalorder %s378_s23, %s378_s23 }
  0x3b   :  { %275 = vmatpush3.bf16.xpose.msk.msra.mxu0 %vm483_vm1, %v270_v4  ;;  %v288_v13 = vpack.c.bf16 %v63_v12, %v62_v11  ;;  %v65_v15 = vld [vmem:[#allocation5 + $0x48] sm:$0xff]  ;;  %v66_v17 = vld [vmem:[#allocation5 + $0x50] sm:$0xff]  ;;  %v67_v18 = vld [vmem:[#allocation5 + $0x58] sm:$0xff] }
  0x3c   :  { %278 = vmatprep.subr.msk.bf16.mxu0 %vm483_vm1, %v276_v6  ;;  %v294_v16 = vpack.c.bf16 %v65_v15, %v64_v14  ;;  %v300_v19 = vpack.c.bf16 %v67_v18, %v66_v17  ;;  %v55_v20 = vld [vmem:[#allocation2 + $0x8] sm:$0xff]  ;;  %v214_v21 = vld [vmem:[#allocation7] ss:$0 sm:$0xff]  ;;  %p385_p13 = por %p384_p12, %p383_p11 }
  0x3e   :  { %p386_p0 = pnand %p385_p13, %p379_p10 }
  0x43   :  { %281 = vmatpush3.bf16.xpose.msk.msra.mxu0 %vm483_vm1, %v276_v6 }
  0x44   :  { %284 = vmatprep.subr.msk.bf16.mxu0 %vm483_vm1, %v282_v10 }
  0x4b   :  { %287 = vmatpush3.bf16.xpose.msk.msra.mxu0 %vm483_vm1, %v282_v10 }
  0x4c   :  { %290 = vmatprep.subr.msk.bf16.mxu0 %vm483_vm1, %v288_v13 }
  0x53   :  { %293 = vmatpush3.bf16.xpose.msk.msra.mxu0 %vm483_vm1, %v288_v13 }
  0x54   :  { %296 = vmatprep.subr.msk.bf16.mxu0 %vm483_vm1, %v294_v16 }
  0x5b   :  { %299 = vmatpush3.bf16.xpose.msk.msra.mxu0 %vm483_vm1, %v294_v16 }
  0x5c   :  { %302 = vmatprep.subr.msk.bf16.mxu0 %vm483_vm1, %v300_v19 }
  0x63   :  { %305 = vmatpush3.bf16.xpose.msk.msra.mxu0 %vm483_vm1, %v300_v19 }
  0x6a   :  { %268 = vmatmul.mubr.msk.f32.vlgmr.msra.gmra.mrb[0].mxu0 %vm75_vm0, %v55_v20 }
 0x13d   :  { %v269_v22 = vpop.f32.mrb[0].mxu0 }
 0x13e   :  { %v190_v23 = vadd.f32 %v269_v22, %v214_v21  ;;  %v184_v24 = vpop.f32.mrb[1].mxu0 }
 0x13f   :  { %v185_v25 = vadd.f32 %v214_v21, %v184_v24 }
 0x140   :  { %195 = vst.msk [vmem:[#allocation8 + $0x8] sm:$0xff] %vm193_vm2, %v190_v23 }
 0x141   :  { %194 = vst.msk [vmem:[#allocation8] sm:$0xff] %vm193_vm2, %v185_v25 }
 0x142   :  { %389 = shalt.err (!%p386_p0)
}
 0x143   :  { %s390_s28 = scalar_lea.hbm %s531_s3, 256 }
 0x144   :  { %p391_p1 = scmp.ne.s32.totalorder %s531_s3, %s390_s28  ;;  %p394_p2 = scmp.lt.u32.totalorder %s390_s28, %s531_s3 }
 0x146   :  { %p396_p3 = pnand %p394_p2, %p391_p1 }
 0x148   :  { %399 = shalt.err (!%p396_p3)
}
 0x149   :  { %207 = dma.vmem_to_hbm [thread:$0]  %s202_s22, 256, %s531_s3, [#allocation4], %s408_s24, %s408_s24, %s409_s25  }
 0x14a   :  { %404 = dma.done.wait [#allocation4], 256  }
 0x14b   :  { %405 = vsyncadd [#allocation4], 4294967040 }
 0x14c   :  { %211 = vsyncpa [#allocation3], 1 }
 0x14d   :  { %212 = vsyncpa [#allocation6], 1 }
 0x14e   :  { %213 = vsyncpa [#allocation4], 1 }

</bundles_post_ra>
